<compile_context>
chip_gen: v7x
topology: tpu7x:2x2x1
jax: 0.10.0
libtpu: 0.0.40
codegen_flags: <defaults>
</compile_context>

<pallas_src>
import functools

import jax
import jax.numpy as jnp
from jax import lax
from jax.experimental import pallas as pl
from jax.experimental.pallas import tpu as pltpu

KERNEL_SIZE = 3
PADDING = KERNEL_SIZE // 2
_LANE = 128
_DEFAULT_STRIP = 64          # rows per grid step (multiple of 16)


def _round_up(x, m):
    return (x + m - 1) // m * m


def _cdiv(a, b):
    return -(-a // b)


def _vmem_capacity_bytes():
    """Physical VMEM per TensorCore; conservative fallback if query fails."""
    try:
        return int(pltpu.get_tpu_info().vmem_capacity_bytes)
    except Exception:
        return 64 * 1024 * 1024          # v7x-sized fallback, safe everywhere


def _per_step_vmem_bytes(strip, kp, chid):
    """Per-grid-step VMEM with lane/sublane padding and double-buffering."""
    gp = _round_up(4 * chid, _LANE)
    patches = 2 * _round_up(strip, 16) * kp * 2                    # bf16
    cprev = 2 * _round_up(strip, 8) * _round_up(chid, _LANE) * 4   # f32
    hc = 2 * _round_up(strip, 8) * _round_up(2 * chid, _LANE) * 4  # f32
    w = 2 * _round_up(kp, 16) * gp * 2                             # bf16
    b = 2 * 8 * gp * 4                                             # f32
    return patches + cprev + hc + w + b


def _convlstm_kernel(patch_ref, cprev_ref, w_ref, b_ref, hc_ref, *, chid):
    """One grid step == one (batch example, row strip).

    patch_ref : (1, strip, Kp)     bf16  im2col patches (tap-major, zero-pad K)
    cprev_ref : (1, strip, Chid)   f32   previous cell state rows
    w_ref     : (Kp, 4*Chid)       bf16  conv weights as one matmul operand
    b_ref     : (1, 4*Chid)        f32   conv bias
    hc_ref    : (1, strip, 2*Chid) f32   out: [..., :Chid]=h, [..., Chid:]=c
    """
    # Single MXU matmul per step: (strip, Kp) x (Kp, 4*Chid), f32 accumulate.
    gates = jnp.dot(patch_ref[0], w_ref[...],
                    preferred_element_type=jnp.float32) + b_ref[...]

    # PyTorch ConvLSTMCell2 gate order: [in, remember, out, cell]
    # sigmoid on the first three quarters, tanh on the last quarter only.
    sig = jax.nn.sigmoid(gates)                    # full slab, one EUP pass
    i_g = sig[:, 0 * chid:1 * chid]
    f_g = sig[:, 1 * chid:2 * chid]
    o_g = sig[:, 2 * chid:3 * chid]
    g_g = jnp.tanh(gates[:, 3 * chid:4 * chid])    # tanh only on g lanes

    c_prev = cprev_ref[0]
    c_next = f_g * c_prev + i_g * g_g
    h_next = o_g * jnp.tanh(c_next)

    hc_ref[0] = jnp.concatenate([h_next, c_next], axis=-1)


@functools.partial(jax.jit, static_argnames=("hidden_size",))
def convlstm_cell2_forward(x_nchw, h_prev_nchw, c_prev_nchw, w_oihw, bias, *,
                           hidden_size):
    """ConvLSTMCell2.forward.

    x_nchw      : (B, Cin, H, W)   f32
    h_prev_nchw : (B, Chid, H, W)  f32
    c_prev_nchw : (B, Chid, H, W)  f32
    w_oihw      : (4*Chid, Cin+Chid, 3, 3) conv weight (PyTorch layout)
    bias        : (4*Chid,)
    returns (hidden_nchw, cell_nchw), both (B, Chid, H, W) f32.
    """
    B, Cin, H, W = x_nchw.shape
    Chid = hidden_size
    C = Cin + Chid
    M = H * W
    K = KERNEL_SIZE * KERNEL_SIZE * C
    Kp = _round_up(K, _LANE)
    G = 4 * Chid

    # --- tiling / VMEM budgeting (generation-aware) -------------------------
    vmem_cap = _vmem_capacity_bytes()
    vmem_limit = int(min(vmem_cap * 7 // 8, 96 * 1024 * 1024))
    budget = int(vmem_cap * 2 // 5)

    strip = min(_DEFAULT_STRIP, _round_up(M, 16))
    while _per_step_vmem_bytes(strip, Kp, Chid) > budget and strip > 16:
        strip = max(16, _round_up(strip // 2, 16))
    n_strips = _cdiv(M, strip)
    # v7x megacore: guarantee >= 2 parallel grid steps when possible.
    if B * n_strips < 2 and M > 16:
        strip = max(16, _round_up(_cdiv(M, 2), 16))
        n_strips = _cdiv(M, strip)
    Mp = n_strips * strip

    # --- layout glue: NCHW -> im2col rows ------------------------------------
    x = jnp.transpose(x_nchw, (0, 2, 3, 1))                       # (B,H,W,Cin)
    h = jnp.transpose(h_prev_nchw, (0, 2, 3, 1))                  # (B,H,W,Chid)
    xh = jnp.concatenate([x, h], axis=-1)                         # (B,H,W,C)
    xp = jnp.pad(xh, ((0, 0), (PADDING, PADDING),
                      (PADDING, PADDING), (0, 0)))                # (B,Hp,Wp,C)
    cols = [xp[:, ky:ky + H, kx:kx + W, :]
            for ky in range(KERNEL_SIZE) for kx in range(KERNEL_SIZE)]
    patches = jnp.concatenate(cols, axis=-1).reshape(B, M, K)     # (B,M,9C)
    patches = jnp.pad(patches, ((0, 0), (0, Mp - M), (0, Kp - K)))
    patches = patches.astype(jnp.bfloat16)                        # MXU operand

    cprev = jnp.transpose(c_prev_nchw, (0, 2, 3, 1)).reshape(B, M, Chid)
    cprev = jnp.pad(cprev, ((0, 0), (0, Mp - M), (0, 0))).astype(jnp.float32)

    # OIHW -> (ky,kx,C, 4*Chid) -> (9*C, 4*Chid); tap-major rows match patches.
    w_mat = jnp.transpose(w_oihw, (2, 3, 1, 0)).reshape(K, G)
    w_mat = jnp.pad(w_mat, ((0, Kp - K), (0, 0))).astype(jnp.bfloat16)
    b2 = bias.reshape(1, G).astype(jnp.float32)

    kernel = functools.partial(_convlstm_kernel, chid=Chid)
    hc = pl.pallas_call(
        kernel,
        out_shape=jax.ShapeDtypeStruct((B, Mp, 2 * Chid), jnp.float32),
        grid_spec=pltpu.PrefetchScalarGridSpec(
            num_scalar_prefetch=0,
            grid=(B, n_strips),
            in_specs=[
                pl.BlockSpec((1, strip, Kp), lambda b, s: (b, s, 0)),
                pl.BlockSpec((1, strip, Chid), lambda b, s: (b, s, 0)),
                pl.BlockSpec((Kp, G), lambda b, s: (0, 0)),
                pl.BlockSpec((1, G), lambda b, s: (0, 0)),
            ],
            out_specs=pl.BlockSpec((1, strip, 2 * Chid),
                                   lambda b, s: (b, s, 0)),
        ),
        compiler_params=pltpu.CompilerParams(
            dimension_semantics=("parallel", "parallel"),
            vmem_limit_bytes=vmem_limit),
    )(patches, cprev, w_mat, b2)

    # rows -> (B, H, W, 2*Chid), drop padded rows; back to NCHW.
    hc = hc[:, :M].reshape(B, H, W, 2 * Chid)
    hidden = jnp.transpose(hc[..., :Chid], (0, 3, 1, 2))
    cell = jnp.transpose(hc[..., Chid:], (0, 3, 1, 2))
    return hidden, cell


def _reference_forward(x, h_prev, c_prev, w_oihw, bias, *, quantize_bf16):
    """Pure-JAX NCHW reference mirroring the PyTorch module.

    With quantize_bf16=True the conv operands are rounded to bf16 first,
    matching the kernel's MXU input precision (bf16 x bf16 -> f32 accumulate).
    The bias add, nonlinearities and state recurrence stay f32 in both.
    """
    combined = jnp.concatenate([x, h_prev], axis=1)
    if quantize_bf16:
        combined = combined.astype(jnp.bfloat16).astype(jnp.float32)
        w_oihw = w_oihw.astype(jnp.bfloat16).astype(jnp.float32)
    gates = lax.conv_general_dilated(
        combined, w_oihw, window_strides=(1, 1),
        padding=((PADDING, PADDING), (PADDING, PADDING)),
        dimension_numbers=("NCHW", "OIHW", "NCHW"))
    gates = gates + bias[None, :, None, None]
    i, f, o, g = jnp.split(gates, 4, axis=1)
    i, f, o = jax.nn.sigmoid(i), jax.nn.sigmoid(f), jax.nn.sigmoid(o)
    g = jnp.tanh(g)
    c = f * c_prev + i * g
    h = o * jnp.tanh(c)
    return h, c


if __name__ == "__main__":
    # Small shapes consistent with the module.
    B, Cin, H, W = 2, 4, 16, 16
    Chid = 32
    C = Cin + Chid

    key = jax.random.PRNGKey(0)
    kx, kh, kc, kw, kb = jax.random.split(key, 5)

    x = jax.random.normal(kx, (B, Cin, H, W), jnp.float32)
    h_prev = jax.random.normal(kh, (B, Chid, H, W), jnp.float32)
    c_prev = jax.random.normal(kc, (B, Chid, H, W), jnp.float32)

    # Synthetic conv parameters (PyTorch Conv2d shapes:
    # weight (4*hidden, input+hidden, 3, 3), bias (4*hidden,)).
    fan_in = C * KERNEL_SIZE * KERNEL_SIZE
    w = jax.random.normal(kw, (4 * Chid, C, KERNEL_SIZE, KERNEL_SIZE),
                          jnp.float32) / jnp.sqrt(fan_in)
    b = jax.random.normal(kb, (4 * Chid,), jnp.float32) * 0.01

    h_next, c_next = convlstm_cell2_forward(x, h_prev, c_prev, w, b,
                                            hidden_size=Chid)
    jax.block_until_ready((h_next, c_next))

    # Check against a pure-JAX reference using the same bf16-quantized conv
    # operands (isolates kernel correctness from the intentional bf16 MXU
    # quantization).
    h_ref, c_ref = _reference_forward(x, h_prev, c_prev, w, b,
                                      quantize_bf16=True)
    assert jnp.allclose(h_next, h_ref, atol=1e-2, rtol=1e-2)
    assert jnp.allclose(c_next, c_ref, atol=1e-2, rtol=1e-2)

    print("KERNEL_OK")
</pallas_src>

<mosaic_0001>
module attributes {stable_mosaic.version = 11 : i64} {
  func.func @_convlstm_kernel(%arg0: i32, %arg1: i32, %arg2: memref<1x64x384xbf16, #tpu.memory_space<vmem>>, %arg3: memref<1x64x32xf32, #tpu.memory_space<vmem>>, %arg4: memref<384x128xbf16, #tpu.memory_space<vmem>>, %arg5: memref<1x128xf32, #tpu.memory_space<vmem>>, %arg6: memref<1x64x64xf32, #tpu.memory_space<vmem>>) attributes {dimension_semantics = [#tpu.dimension_semantics<parallel>, #tpu.dimension_semantics<parallel>], iteration_bounds = array<i64: 2, 4>, scalar_prefetch = 0 : i64, scratch_operands = 0 : i64, tpu.core_type = #tpu.core_type<tc>, window_params = [{transform_indices = @transform_0, window_bounds = array<i64: 1, 64, 384>}, {transform_indices = @transform_1, window_bounds = array<i64: 1, 64, 32>}, {pipeline_mode = #tpu.pipeline_mode<synchronous>, transform_indices = @transform_2, window_bounds = array<i64: 384, 128>}, {pipeline_mode = #tpu.pipeline_mode<synchronous>, transform_indices = @transform_3, window_bounds = array<i64: 1, 128>}, {transform_indices = @transform_4, window_bounds = array<i64: 1, 64, 64>}]} {
    %c0 = arith.constant 0 : index
    %c0_0 = arith.constant 0 : index
    %c0_1 = arith.constant 0 : index
    %0 = vector.load %arg2[%c0, %c0_0, %c0_1] : memref<1x64x384xbf16, #tpu.memory_space<vmem>>, vector<1x64x384xbf16>
    %1 = vector.shape_cast %0 : vector<1x64x384xbf16> to vector<64x384xbf16>
    %c0_2 = arith.constant 0 : index
    %c0_3 = arith.constant 0 : index
    %2 = vector.load %arg4[%c0_2, %c0_3] : memref<384x128xbf16, #tpu.memory_space<vmem>>, vector<384x128xbf16>
    %cst = arith.constant dense<0.000000e+00> : vector<64x128xf32>
    %3 = tpu.matmul %1, %2, %cst {dimension_numbers = #tpu.dot_dimension_numbers<[1], [0], [0], [1], [0, 0, 1, 1], [], []>} : vector<64x384xbf16>, vector<384x128xbf16>, vector<64x128xf32> -> vector<64x128xf32>
    %c0_4 = arith.constant 0 : index
    %c0_5 = arith.constant 0 : index
    %4 = vector.load %arg5[%c0_4, %c0_5] : memref<1x128xf32, #tpu.memory_space<vmem>>, vector<1x128xf32>
    %5 = vector.broadcast %4 : vector<1x128xf32> to vector<64x128xf32>
    %6 = arith.addf %3, %5 : vector<64x128xf32>
    %7 = arith.negf %6 : vector<64x128xf32>
    %8 = math.exp %7 : vector<64x128xf32>
    %cst_6 = arith.constant 1.000000e+00 : f32
    %9 = vector.broadcast %cst_6 : f32 to vector<64x128xf32>
    %10 = arith.addf %9, %8 : vector<64x128xf32>
    %11 = arith.divf %9, %10 : vector<64x128xf32>
    %12 = vector.extract_strided_slice %11 {offsets = [0, 0], sizes = [64, 32], strides = [1, 1]} : vector<64x128xf32> to vector<64x32xf32>
    %13 = vector.extract_strided_slice %11 {offsets = [0, 32], sizes = [64, 32], strides = [1, 1]} : vector<64x128xf32> to vector<64x32xf32>
    %14 = vector.extract_strided_slice %11 {offsets = [0, 64], sizes = [64, 32], strides = [1, 1]} : vector<64x128xf32> to vector<64x32xf32>
    %15 = vector.extract_strided_slice %6 {offsets = [0, 96], sizes = [64, 32], strides = [1, 1]} : vector<64x128xf32> to vector<64x32xf32>
    %16 = math.tanh %15 : vector<64x32xf32>
    %c0_7 = arith.constant 0 : index
    %c0_8 = arith.constant 0 : index
    %c0_9 = arith.constant 0 : index
    %17 = vector.load %arg3[%c0_7, %c0_8, %c0_9] : memref<1x64x32xf32, #tpu.memory_space<vmem>>, vector<1x64x32xf32>
    %18 = vector.shape_cast %17 : vector<1x64x32xf32> to vector<64x32xf32>
    %19 = arith.mulf %13, %18 : vector<64x32xf32>
    %20 = arith.mulf %12, %16 : vector<64x32xf32>
    %21 = arith.addf %19, %20 : vector<64x32xf32>
    %22 = math.tanh %21 : vector<64x32xf32>
    %23 = arith.mulf %14, %22 : vector<64x32xf32>
    %24 = tpu.concatenate %23, %21 in 1 : vector<64x32xf32>, vector<64x32xf32> -> vector<64x64xf32>
    %c0_10 = arith.constant 0 : index
    %c0_11 = arith.constant 0 : index
    %c0_12 = arith.constant 0 : index
    %25 = vector.load %arg6[%c0_10, %c0_11, %c0_12] : memref<1x64x64xf32, #tpu.memory_space<vmem>>, vector<1x64x64xf32>
    %26 = vector.shape_cast %25 : vector<1x64x64xf32> to vector<64x64xf32>
    %27 = vector.shape_cast %24 : vector<64x64xf32> to vector<1x64x64xf32>
    tpu.vector_store %arg6[%c0_10, %c0_11, %c0_12], %27 {strides = array<i32>} : memref<1x64x64xf32, #tpu.memory_space<vmem>>, vector<1x64x64xf32>,
    return
  }
  func.func @transform_0(%arg0: i32, %arg1: i32) -> (i32, i32, i32) {
    %c0_i32 = arith.constant 0 : i32
    %c0_i32_0 = arith.constant 0 : i32
    return %arg0, %arg1, %c0_i32 : i32, i32, i32
  }
  func.func @transform_1(%arg0: i32, %arg1: i32) -> (i32, i32, i32) {
    %c0_i32 = arith.constant 0 : i32
    %c0_i32_0 = arith.constant 0 : i32
    return %arg0, %arg1, %c0_i32 : i32, i32, i32
  }
  func.func @transform_2(%arg0: i32, %arg1: i32) -> (i32, i32) {
    %c0_i32 = arith.constant 0 : i32
    %c0_i32_0 = arith.constant 0 : i32
    %c0_i32_1 = arith.constant 0 : i32
    return %c0_i32, %c0_i32_0 : i32, i32
  }
  func.func @transform_3(%arg0: i32, %arg1: i32) -> (i32, i32) {
    %c0_i32 = arith.constant 0 : i32
    %c0_i32_0 = arith.constant 0 : i32
    %c0_i32_1 = arith.constant 0 : i32
    return %c0_i32, %c0_i32_0 : i32, i32
  }
  func.func @transform_4(%arg0: i32, %arg1: i32) -> (i32, i32, i32) {
    %c0_i32 = arith.constant 0 : i32
    %c0_i32_0 = arith.constant 0 : i32
    return %arg0, %arg1, %c0_i32 : i32, i32, i32
  }
}

</mosaic_0001>

<bundles_post_ra>
// kernel: convlstm_cell2_forward.1
= control target key start
LH: loop header
LB: loop body
LE: loop exit
PB: predicated region body
PF: predicated region fallthrough
CT: control target
= control target key end

     0   :  { %s1430_s15 = smov 0   ;;  %s1432_s16 = smov 0   ;;  %s1727_s0 = inlined_call_operand.vmem [shape: bf16[2,256,384], index: 0, kind: input, shape index: {}]   ;;  %s1728_s1 = inlined_call_operand.vmem [shape: f32[2,256,32], index: 1, kind: input, shape index: {}]   ;;  %s1729_s2 = inlined_call_operand.vmem [shape: bf16[384,128], index: 2, kind: input, shape index: {}]   ;;  %s1730_s3 = inlined_call_operand.vmem [shape: f32[1,128], index: 3, kind: input, shape index: {}]   ;;  %s1731_s4 = inlined_call_operand.vmem [shape: f32[2,256,64], index: 4, kind: output, shape index: {}]  }
   0x1   :  { %s1434_s17 = smov 0   ;;  %s1436_s18 = smov 0  }
   0x2   :  { %s1438_s19 = smov 0  }
   0x3 LB: > { %s23_s20 = sadd.s32 1, %s1393_s17  ;;  %s26_s21 = sadd.s32 1, %s1397_s18  ;;  %s1401_s19 = sphi %s1438_s19, %s14_s19   ;;  %s1397_s18 = sphi %s1436_s18, %s1735_s18   ;;  %s1393_s17 = sphi %s1434_s17, %s1734_s17   ;;  %s1389_s16 = sphi %s1432_s16, %s1733_s16   ;;  %s1385_s15 = sphi %s1430_s15, %s1732_s15  }
   0x4   : > { %p24_p0 = scmp.ge.s32.totalorder %s23_s20, 4  ;;  %p1083_p1 = scmp.ge.s32.totalorder %s1401_s19, 1 }
   0x5   : > { %p201_p2 = scmp.lt.s32.totalorder %s1401_s19, 9 }
   0x6   : > { %s1737_s20 = smov (%p24_p0, %s23_s20), 0  ;;  %s1739_s21 = smov (!%p24_p0, %s26_s21), %s1397_s18 }
   0x7   : > { %p202_p3 = pnand %p1083_p1, %p201_p2  ;;  %p28_p4 = scmp.ge.s32.totalorder %s1739_s21, 2 }
   0x8   : > { %v1259_v0 = vld [vmem:[%s1729_s2 + $0x40] sm:$0xff] (!%p202_p3)   ;;  %s1084_s24 = sshll.u32 (!%p202_p3), %s1385_s15, 3  ;;  %v1261_v2 = vld [vmem:[%s1729_s2 + $0x48] sm:$0xff] (!%p202_p3)   ;;  %p246_p5 = scmp.lt.s32.totalorder (!%p202_p3), %s1389_s16, 1  ;;  %v1264_v5 = vld [vmem:[%s1729_s2 + $0x50] sm:$0xff] (!%p202_p3)   ;;  %vm950_vm0 = vcmask (!%p202_p3), 261120  }
   0x9   : > { %s1741_s21 = smov (%p28_p4, %s1739_s21), 0  ;;  %205 = sbr.rel (%p202_p3) target bundleno = 777 (0x309), region = 36 }
   0xa   : > { %v1260_v1 = vld [vmem:[%s1729_s2] sm:$0xff] (!%p202_p3)   ;;  %1139 = vmatprep.subr.bf16.mxu0 (!%p202_p3), %v1259_v0  ;;  %p248_p6 = scmp.lt.s32.totalorder (!%p202_p3), %s1084_s24, 31  ;;  %v1263_v4 = vld [vmem:[%s1729_s2 + $0x8] sm:$0xff] (!%p202_p3)   ;;  %v1266_v7 = vld [vmem:[%s1729_s2 + $0x10] sm:$0xff] (!%p202_p3)   ;;  %s1403_s22 = smov (!%p202_p3), 32   ;;  %vm959_vm1 = vcmask (!%p202_p3), 523264  }
   0xb   : > { %1140 = vmatpush3.bf16.msra.mxu0 (!%p202_p3), %v1260_v1  ;;  %v1262_v3 = vld [vmem:[%s1729_s2 + $0x80] sm:$0xff] (!%p202_p3)   ;;  %v1265_v6 = vld [vmem:[%s1729_s2 + $0x88] sm:$0xff] (!%p202_p3)   ;;  %v1267_v8 = vld [vmem:[%s1729_s2 + $0x58] sm:$0xff] (!%p202_p3)  }
   0xc   : > { %1141 = vmatprep.subr.bf16.mxu0 (!%p202_p3), %v1261_v2  ;;  %1191 = vmatprep.subr.bf16.mxu1 (!%p202_p3), %v1262_v3  ;;  %v1268_v9 = vld [vmem:[%s1729_s2 + $0x90] sm:$0xff] (!%p202_p3)   ;;  %v1269_v10 = vld [vmem:[%s1729_s2 + $0x18] sm:$0xff] (!%p202_p3)   ;;  %v1270_v11 = vld [vmem:[%s1729_s2 + $0x60] sm:$0xff] (!%p202_p3)  }
   0xd   : > { %1192 = vmatpush3.bf16.msra.mxu1 (!%p202_p3), %v1262_v3  ;;  %v1271_v12 = vld [vmem:[%s1729_s2 + $0x98] sm:$0xff] (!%p202_p3)   ;;  %v1272_v13 = vld [vmem:[%s1729_s2 + $0x20] sm:$0xff] (!%p202_p3)   ;;  %v1273_v15 = vld [vmem:[%s1729_s2 + $0x68] sm:$0xff] (!%p202_p3)  }
   0xe   : > { %1193 = vmatprep.subr.bf16.mxu1 (!%p202_p3), %v1265_v6  ;;  %v1274_v14 = vld [vmem:[%s1729_s2 + $0xa0] sm:$0xff] (!%p202_p3)   ;;  %v1275_v16 = vld [vmem:[%s1729_s2 + $0x28] sm:$0xff] (!%p202_p3)   ;;  %v1276_v18 = vld [vmem:[%s1729_s2 + $0x70] sm:$0xff] (!%p202_p3)  }
   0xf   : > { %1142 = vmatpush3.bf16.msra.mxu0 (!%p202_p3), %v1263_v4  ;;  %v1277_v17 = vld [vmem:[%s1729_s2 + $0xa8] sm:$0xff] (!%p202_p3)   ;;  %v1278_v19 = vld [vmem:[%s1729_s2 + $0x30] sm:$0xff] (!%p202_p3)   ;;  %v1279_v20 = vld [vmem:[%s1729_s2 + $0x78] sm:$0xff] (!%p202_p3)  }
  0x10   : > { %s1743_s16 = smov (!%p246_p5, %s1389_s16), 1  ;;  %s1745_s24 = smov (!%p248_p6, %s1084_s24), 31  ;;  %1143 = vmatprep.subr.bf16.mxu0 %v1264_v5  ;;  %v1280_v21 = vld [vmem:[%s1729_s2 + $0xb0] sm:$0xff]   ;;  %v1281_v23 = vld [vmem:[%s1729_s2 + $0x38] sm:$0xff]   ;;  %v1092_v38 = vld [vmem:[%s1730_s3] ss:$0 sm:$0xff] }
  0x11   : > { %1194 = vmatpush3.bf16.msra.mxu1 %v1265_v6  ;;  %s1216_s26 = smul.u32 96, %s1743_s16  ;;  %v1285_v25 = vld [vmem:[%s1729_s2 + $0xb8] sm:$0xff]   ;;  %s1087_s23 = sshll.u32 %s1743_s16, 5 }
  0x12   : > { %1195 = vmatprep.subr.bf16.mxu1 %v1268_v9  ;;  %s1215_s29 = smul.u32 3, %s1745_s24  ;;  %s1584_s25 = sadd.s32 %s1087_s23, %s1745_s24 }
  0x13   : > { %1144 = vmatpush3.bf16.msra.mxu0 %v1266_v7  ;;  %s1404_s16 = smov 64  }
  0x14   : > { %1145 = vmatprep.subr.bf16.mxu0 %v1267_v8  ;;  %s252_s10 = sadd.s32 %s1216_s26, %s1215_s29  ;;  %s1088_s26 = sshll.u32 %s1584_s25, 3 }
  0x15   : > { %1196 = vmatpush3.bf16.msra.mxu1 %v1268_v9  ;;  %s1085_s15 = sshll.u32 %s252_s10, 2  ;;  %s264_s29 = scalar_lea.vmem %s1728_s1, %s1088_s26 }
  0x16   : > { %1197 = vmatprep.subr.bf16.mxu1 %v1271_v12  ;;  %s1536_s5 = scalar_lea.vmem %s1727_s0, %s1085_s15 }
  0x17   : > { %1146 = vmatpush3.bf16.msra.mxu0 %v1269_v10  ;;  %v1284_v22 = vld [vmem:[%s1536_s5 + $0x4] ss:$12 sps:$4 sm:$0xff]   ;;  %v1286_v24 = vld [vmem:[%s1536_s5 + $0x8] ss:$12 sps:$4 sm:$0xff]   ;;  %v1282_v26 = vld [vmem:[%s1536_s5] ss:$12 sps:$4 sm:$0xff]  }
  0x18   : > { %1147 = vmatprep.subr.bf16.mxu0 %v1270_v11  ;;  %588 = vmatprep.mubr.bf16.mxu0 %v1284_v22  ;;  %v1288_v27 = vld [vmem:[%s1536_s5 + $0x1c] ss:$12 sps:$4 sm:$0xff]   ;;  %v1287_v28 = vld [vmem:[%s1536_s5 + $0x20] ss:$12 sps:$4 sm:$0xff]   ;;  %v1294_v29 = vld [vmem:[%s1536_s5 + $0x38] ss:$12 sps:$4 sm:$0xff]  }
  0x19   : > { %1198 = vmatpush3.bf16.msra.mxu1 %v1271_v12  ;;  %1207 = vmatprep.mubr.bf16.mxu1 %v1286_v24  ;;  %v1290_v30 = vld [vmem:[%s1536_s5 + $0x18] ss:$12 sps:$4 sm:$0xff]   ;;  %v1291_v31 = vld [vmem:[%s1536_s5 + $0x34] ss:$12 sps:$4 sm:$0xff]   ;;  %v1295_v32 = vld [vmem:[%s1536_s5 + $0x50] ss:$12 sps:$4 sm:$0xff]  }
  0x1a   : > { %1199 = vmatprep.subr.bf16.mxu1 %v1274_v14  ;;  %v1293_v33 = vld [vmem:[%s1536_s5 + $0x30] ss:$12 sps:$4 sm:$0xff]   ;;  %v1296_v34 = vld [vmem:[%s1536_s5 + $0x4c] ss:$12 sps:$4 sm:$0xff]   ;;  %v1298_v35 = vld [vmem:[%s1536_s5 + $0x48] ss:$12 sps:$4 sm:$0xff]   ;;  %s274_s5 = scalar_lea.vmem %s1731_s4, %s1088_s26 }
  0x1b   : > { %1148 = vmatpush3.bf16.msra.mxu0 %v1272_v13 }
  0x1c   : > { %1149 = vmatprep.subr.bf16.mxu0 %v1273_v15 }
  0x1d   : > { %1200 = vmatpush3.bf16.msra.mxu1 %v1274_v14 }
  0x1e   : > { %1201 = vmatprep.subr.bf16.mxu1 %v1277_v17 }
  0x1f   : > { %1150 = vmatpush3.bf16.msra.mxu0 %v1275_v16 }
  0x20   : > { %1151 = vmatprep.subr.bf16.mxu0 %v1276_v18 }
  0x21   : > { %1202 = vmatpush3.bf16.msra.mxu1 %v1277_v17 }
  0x22   : > { %1203 = vmatprep.subr.bf16.mxu1 %v1280_v21 }
  0x23   : > { %1152 = vmatpush3.bf16.msra.mxu0 %v1278_v19 }
  0x24   : > { %1153 = vmatprep.subr.bf16.mxu0 %v1279_v20 }
  0x25   : > { %1204 = vmatpush3.bf16.msra.mxu1 %v1280_v21 }
  0x26   : > { %1205 = vmatprep.subr.bf16.mxu1 %v1285_v25 }
  0x27   : > { %1154 = vmatpush3.bf16.msra.mxu0 %v1281_v23 }
  0x29   : > { %1206 = vmatpush3.bf16.msra.mxu1 %v1285_v25 }
  0x2a   : > { %589 = vmatmul.mubr.bf16.vlgmr.msra.gmra.mrb[0].mxu0 %v1282_v26 }
  0x2b   : > { %596 = vmatprep.mubr.bf16.mxu0 %v1288_v27 }
  0x2c   : > { %1208 = vmatmul.mubr.bf16.vlgmr.msra.gmra.mrb[0].mxu1 %v1287_v28  ;;  %v742_v28 = vld [vmem:[%s264_s29] sm:$0xff] }
  0x2d   : > { %1211 = vmatprep.mubr.bf16.mxu1 %v1294_v29 }
  0x32   : > { %597 = vmatmul.mubr.bf16.gmra.mrb[4].mxu0 %v1290_v30  ;;  %v743_v30 = vld [vmem:[%s264_s29 + $0x8] sm:$0xff] }
  0x33   : > { %604 = vmatprep.mubr.bf16.mxu0 %v1291_v31  ;;  %v744_v31 = vld [vmem:[%s264_s29 + $0x10] sm:$0xff] }
  0x34   : > { %1212 = vmatmul.mubr.bf16.gmra.mrb[4].mxu1 %v1295_v32  ;;  %v745_v32 = vld [vmem:[%s264_s29 + $0x18] sm:$0xff] }
  0x3a   : > { %605 = vmatmul.mubr.bf16.gmra.mrb[8].mxu0 %v1293_v33  ;;  %v746_v33 = vld [vmem:[%s264_s29 + $0x20] sm:$0xff] }
  0x3b   : > { %612 = vmatprep.mubr.bf16.mxu0 %v1296_v34  ;;  %v747_v34 = vld [vmem:[%s264_s29 + $0x28] sm:$0xff] }
  0x42   : > { %613 = vmatmul.mubr.bf16.gmra.mrb[12].mxu0 %v1298_v35  ;;  %v748_v35 = vld [vmem:[%s264_s29 + $0x30] sm:$0xff] }
  0xfd   : > { %v1155_v36 = vpop.f32.mrb[0].mxu0 }
  0xfe   : > { %v1156_v37 = vpop.f32.mrb[1].mxu0 }
  0xff   : > { %v1157_v39 = vadd.f32 %v1156_v37, %v1155_v36  ;;  %v1158_v40 = vpop.f32.mrb[2].mxu0  ;;  %v1209_v42 = vpop.f32.mrb[0].mxu1  ;;  %v749_v36 = vld [vmem:[%s264_s29 + $0x38] sm:$0xff] }
 0x100   : > { %v1159_v41 = vpop.f32.mrb[3].mxu0  ;;  %v655_v45 = vpop.f32.mrb[1].mxu1 }
 0x101   : > { %v1160_v43 = vadd.f32 %v1159_v41, %v1158_v40  ;;  %v591_v44 = vadd.f32 %v1157_v39, %v1092_v38  ;;  %v1210_v46 = vpop.f32.mrb[2].mxu1 }
 0x102   : > { %v658_v49 = vpop.f32.mrb[3].mxu1 }
 0x103   : > { %v1565_v47 = vadd.f32 %v655_v45, %v591_v44  ;;  %v594_v48 = vadd.f32 %v1160_v43, %v1092_v38 }
 0x105   : > { %1299 = vtanh.f32 %v1565_v47  ;;  %v1568_v50 = vadd.f32 %v658_v49, %v594_v48  ;;  %v1161_v51 = vpop.f32.mrb[4].mxu0  ;;  %v1129_v37 = vmul.f32 -1.442695, %v1565_v47 }
 0x106   : > { %v1162_v52 = vpop.f32.mrb[5].mxu0 }
 0x107   : > { %v1163_v53 = vadd.f32 %v1162_v52, %v1161_v51  ;;  %v1164_v54 = vpop.f32.mrb[6].mxu0  ;;  %v1213_v56 = vpop.f32.mrb[4].mxu1  ;;  %1301 = vtanh.f32 %v1568_v50 }
 0x108   : > { %v1165_v55 = vpop.f32.mrb[7].mxu0  ;;  %v671_v59 = vpop.f32.mrb[5].mxu1 }
 0x109   : > { %v599_v57 = vadd.f32 %v1163_v53, %v1092_v38  ;;  %v1166_v58 = vadd.f32 %v1165_v55, %v1164_v54  ;;  %v1214_v60 = vpop.f32.mrb[6].mxu1 }
 0x10a   : > { %v674_v63 = vpop.f32.mrb[7].mxu1 }
 0x10b   : > { %v1571_v61 = vadd.f32 %v1209_v42, %v599_v57  ;;  %v602_v62 = vadd.f32 %v1166_v58, %v1092_v38 }
 0x10d   : > { %1303 = vtanh.f32 %v1571_v61  ;;  %v1574_v0 = vadd.f32 %v1210_v46, %v602_v62  ;;  %v1167_v1 = vpop.f32.mrb[8].mxu0  ;;  %v1131_v39 = vmul.f32 -1.442695, %v1571_v61 }
 0x10e   : > { %v1168_v2 = vpop.f32.mrb[9].mxu0 }
 0x10f   : > { %v1300_v3 = vpop.eup %1299  ;;  %v1169_v4 = vadd.f32 %v1168_v2, %v1167_v1  ;;  %v1170_v5 = vpop.f32.mrb[10].mxu0  ;;  %1305 = vtanh.f32 %v1574_v0  ;;  %v1132_v40 = vmul.f32 -1.442695, %v1574_v0 }
 0x110   : > { %v1171_v6 = vpop.f32.mrb[11].mxu0  ;;  %798 = vrot.lane.b32.xlu0 %v1300_v3, %s1403_s22 }
 0x111   : > { %v1172_v7 = vadd.f32 %v1171_v6, %v1170_v5  ;;  %v607_v8 = vadd.f32 %v1169_v4, %v1092_v38  ;;  %v1302_v9 = vpop.eup %1301 }
 0x113   : > { %v672_v10 = vadd.f32 %v671_v59, %v607_v8  ;;  %v610_v11 = vadd.f32 %v1172_v7, %v1092_v38 }
 0x114   : > { %800 = vrot.lane.b32.xlu0 %v1302_v9, %s1403_s22 }
 0x115   : > { %1307 = vtanh.f32 %v672_v10  ;;  %v675_v12 = vadd.f32 %v674_v63, %v610_v11  ;;  %v1173_v13 = vpop.f32.mrb[12].mxu0  ;;  %v1133_v42 = vmul.f32 -1.442695, %v672_v10 }
 0x116   : > { %v1174_v14 = vpop.f32.mrb[13].mxu0 }
 0x117   : > { %v1304_v15 = vpop.eup %1303  ;;  %v1175_v16 = vadd.f32 %v1174_v14, %v1173_v13  ;;  %v1176_v17 = vpop.f32.mrb[14].mxu0  ;;  %1309 = vtanh.f32 %v675_v12  ;;  %v1134_v45 = vmul.f32 -1.442695, %v675_v12 }
 0x118   : > { %v1177_v18 = vpop.f32.mrb[15].mxu0  ;;  %802 = vrot.lane.b32.xlu1 %v1304_v15, %s1403_s22 }
 0x119   : > { %v615_v19 = vadd.f32 %v1175_v16, %v1092_v38  ;;  %v1178_v20 = vadd.f32 %v1177_v18, %v1176_v17  ;;  %v1306_v21 = vpop.eup %1305 }
 0x11b   : > { %v680_v22 = vadd.f32 %v1213_v56, %v615_v19  ;;  %v618_v23 = vadd.f32 %v1178_v20, %v1092_v38  ;;  %v1130_v38 = vmul.f32 -1.442695, %v1568_v50 }
 0x11c   : > { %804 = vrot.lane.b32.xlu1 %v1306_v21, %s1403_s22 }
 0x11d   : > { %1311 = vtanh.f32 %v680_v22  ;;  %v683_v24 = vadd.f32 %v1214_v60, %v618_v23  ;;  %v1135_v47 = vmul.f32 -1.442695, %v680_v22 }
 0x11f   : > { %v1308_v25 = vpop.eup %1307  ;;  %1313 = vtanh.f32 %v683_v24  ;;  %v1136_v51 = vmul.f32 -1.442695, %v683_v24 }
 0x120   : > { %806 = vrot.lane.b32.xlu0 %v1308_v25, %s1403_s22  ;;  %1315 = vpow2.f32 %v1129_v37 }
 0x121   : > { %v1310_v26 = vpop.eup %1309  ;;  %1317 = vpow2.f32 %v1130_v38 }
 0x122   : > { %808 = vrot.lane.b32.xlu1 %v1310_v26, %s1403_s22  ;;  %1319 = vpow2.f32 %v1131_v39 }
 0x123   : > { %1321 = vpow2.f32 %v1132_v40 }
 0x124   : > { %1323 = vpow2.f32 %v1133_v42 }
 0x127   : > { %v1312_v27 = vpop.eup %1311 }
 0x128   : > { %810 = vrot.lane.b32.xlu0 %v1312_v27, %s1403_s22 }
 0x129   : > { %v1314_v29 = vpop.eup %1313 }
 0x12a   : > { %812 = vrot.lane.b32.xlu1 %v1314_v29, %s1403_s22  ;;  %v1316_v41 = vpop.eup %1315 }
 0x12b   : > { %v710_v43 = vadd.f32 1.0, %v1316_v41  ;;  %v1318_v44 = vpop.eup %1317 }
 0x12c   : > { %758 = vrot.lane.b32.xlu0 %v742_v28, %s1403_s22  ;;  %v711_v46 = vadd.f32 1.0, %v1318_v44  ;;  %v1320_v48 = vpop.eup %1319 }
 0x12d   : > { %1325 = vrcp.f32 %v710_v43  ;;  %v712_v49 = vadd.f32 1.0, %v1320_v48  ;;  %v1322_v50 = vpop.eup %1321 }
 0x12e   : > { %760 = vrot.lane.b32.xlu1 %v743_v30, %s1403_s22  ;;  %1327 = vpow2.f32 %v1134_v45  ;;  %v713_v52 = vadd.f32 1.0, %v1322_v50  ;;  %v1324_v53 = vpop.eup %1323 }
 0x12f   : > { %1329 = vrcp.f32 %v711_v46  ;;  %v714_v58 = vadd.f32 1.0, %v1324_v53 }
 0x130   : > { %762 = vrot.lane.b32.xlu0 %v744_v31, %s1403_s22  ;;  %1331 = vpow2.f32 %v1135_v47 }
 0x131   : > { %1333 = vrcp.f32 %v712_v49 }
 0x132   : > { %764 = vrot.lane.b32.xlu1 %v745_v32, %s1403_s22  ;;  %1335 = vpow2.f32 %v1136_v51 }
 0x133   : > { %1337 = vrcp.f32 %v713_v52 }
 0x134   : > { %766 = vrot.lane.b32.xlu0 %v746_v33, %s1403_s22  ;;  %1339 = vrcp.f32 %v714_v58 }
 0x136   : > { %768 = vrot.lane.b32.xlu1 %v747_v34, %s1403_s22 }
 0x137   : > { %v1607_v54 = vpop.eup %1325 }
 0x138   : > { %770 = vrot.lane.b32.xlu0 %v748_v35, %s1403_s22  ;;  %v1328_v57 = vpop.eup %1327 }
 0x139   : > { %v1611_v59 = vpop.eup %1329  ;;  %v715_v61 = vadd.f32 1.0, %v1328_v57 }
 0x13a   : > { %772 = vrot.lane.b32.xlu1 %v749_v36, %s1403_s22  ;;  %v1332_v63 = vpop.eup %1331 }
 0x13b   : > { %v1615_v0 = vpop.eup %1333  ;;  %1341 = vrcp.f32 %v715_v61  ;;  %v716_v4 = vadd.f32 1.0, %v1332_v63 }
 0x13c   : > { %v1336_v3 = vpop.eup %1335 }
 0x13d   : > { %v1619_v5 = vpop.eup %1337  ;;  %v717_v7 = vadd.f32 1.0, %v1336_v3  ;;  %1343 = vrcp.f32 %v716_v4 }
 0x13e   : > { %v1623_v9 = vpop.eup %1339 }
 0x13f   : > { %1345 = vrcp.f32 %v717_v7 }
 0x145   : > { %v1626_v12 = vpop.eup %1341 }
 0x147   : > { %v1631_v15 = vpop.eup %1343 }
 0x149   : > { %v1634_v18 = vpop.eup %1345 }
 0x182   : > { %v799_v55 = vpop.permute.xlu0 %798 }
 0x183   : > { %v822_v56 = vmul.f32 %v1607_v54, %v799_v55 }
 0x185   : > { %838 = vrot.lane.b32.xlu0 %v822_v56, %s1403_s22 }
 0x186   : > { %v801_v60 = vpop.permute.xlu0 %800 }
 0x187   : > { %v823_v62 = vmul.f32 %v1611_v59, %v801_v60 }
 0x189   : > { %840 = vrot.lane.b32.xlu1 %v823_v62, %s1403_s22 }
 0x18a   : > { %v803_v1 = vpop.permute.xlu1 %802 }
 0x18b   : > { %v824_v2 = vmul.f32 %v1615_v0, %v803_v1 }
 0x18d   : > { %842 = vrot.lane.b32.xlu0 %v824_v2, %s1403_s22 }
 0x18e   : > { %v805_v6 = vpop.permute.xlu1 %804 }
 0x18f   : > { %v825_v8 = vmul.f32 %v1619_v5, %v805_v6 }
 0x191   : > { %844 = vrot.lane.b32.xlu1 %v825_v8, %s1403_s22 }
 0x192   : > { %v807_v10 = vpop.permute.xlu0 %806 }
 0x193   : > { %v826_v11 = vmul.f32 %v1623_v9, %v807_v10 }
 0x194   : > { %v809_v13 = vpop.permute.xlu1 %808 }
 0x195   : > { %846 = vrot.lane.b32.xlu0 %v826_v11, %s1403_s22  ;;  %v827_v14 = vmul.f32 %v1626_v12, %v809_v13 }
 0x197   : > { %848 = vrot.lane.b32.xlu1 %v827_v14, %s1403_s22 }
 0x19a   : > { %v811_v16 = vpop.permute.xlu0 %810 }
 0x19b   : > { %v828_v17 = vmul.f32 %v1631_v15, %v811_v16 }
 0x19c   : > { %v813_v19 = vpop.permute.xlu1 %812 }
 0x19d   : > { %850 = vrot.lane.b32.xlu0 %v828_v17, %s1403_s22  ;;  %v829_v20 = vmul.f32 %v1634_v18, %v813_v19 }
 0x19e   : > { %v759_v21 = vpop.permute.xlu0 %758 }
 0x19f   : > { %852 = vrot.lane.b32.xlu1 %v829_v20, %s1403_s22  ;;  %v782_v28 = vmul.f32 %v1607_v54, %v759_v21 }
 0x1a0   : > { %v761_v22 = vpop.permute.xlu1 %760 }
 0x1a1   : > { %v783_v32 = vmul.f32 %v1611_v59, %v761_v22 }
 0x1a2   : > { %v763_v23 = vpop.permute.xlu0 %762 }
 0x1a3   : > { %v784_v35 = vmul.f32 %v1615_v0, %v763_v23 }
 0x1a4   : > { %v765_v24 = vpop.permute.xlu1 %764 }
 0x1a5   : > { %v785_v38 = vmul.f32 %v1619_v5, %v765_v24 }
 0x1a6   : > { %v767_v25 = vpop.permute.xlu0 %766 }
 0x1a7   : > { %v786_v42 = vmul.f32 %v1623_v9, %v767_v25 }
 0x1a8   : > { %v769_v26 = vpop.permute.xlu1 %768 }
 0x1a9   : > { %v787_v46 = vmul.f32 %v1626_v12, %v769_v26 }
 0x1aa   : > { %v771_v27 = vpop.permute.xlu0 %770 }
 0x1ab   : > { %v788_v50 = vmul.f32 %v1631_v15, %v771_v27 }
 0x1ac   : > { %v773_v29 = vpop.permute.xlu1 %772 }
 0x1ad   : > { %v789_v55 = vmul.f32 %v1634_v18, %v773_v29 }
 0x1f7   : > { %v839_v30 = vpop.permute.xlu0 %838 }
 0x1f8   : > { %v1640_v31 = vadd.f32 %v839_v30, %v782_v28 }
 0x1fa   : > { %1347 = vtanh.f32 %v1640_v31 }
 0x1fb   : > { %v841_v33 = vpop.permute.xlu1 %840 }
 0x1fc   : > { %v1644_v34 = vadd.f32 %v841_v33, %v783_v32 }
 0x1fe   : > { %1349 = vtanh.f32 %v1644_v34 }
 0x1ff   : > { %v843_v36 = vpop.permute.xlu0 %842 }
 0x200   : > { %v1648_v37 = vadd.f32 %v843_v36, %v784_v35 }
 0x202   : > { %1351 = vtanh.f32 %v1648_v37 }
 0x203   : > { %v845_v39 = vpop.permute.xlu1 %844 }
 0x204   : > { %v1348_v40 = vpop.eup %1347  ;;  %v1652_v41 = vadd.f32 %v845_v39, %v785_v38 }
 0x205   : > { %886 = vrot.lane.b32.xlu0 %v1348_v40, %s1403_s22 }
 0x206   : > { %1353 = vtanh.f32 %v1652_v41 }
 0x207   : > { %v847_v43 = vpop.permute.xlu0 %846 }
 0x208   : > { %v1350_v44 = vpop.eup %1349  ;;  %v1657_v45 = vadd.f32 %v847_v43, %v786_v42 }
 0x209   : > { %888 = vrot.lane.b32.xlu1 %v1350_v44, %s1403_s22  ;;  %v849_v48 = vpop.permute.xlu1 %848 }
 0x20a   : > { %1355 = vtanh.f32 %v1657_v45  ;;  %v1662_v47 = vadd.f32 %v849_v48, %v787_v46 }
 0x20c   : > { %v1352_v49 = vpop.eup %1351  ;;  %1357 = vtanh.f32 %v1662_v47 }
 0x20d   : > { %890 = vrot.lane.b32.xlu0 %v1352_v49, %s1403_s22 }
 0x20f   : > { %v851_v51 = vpop.permute.xlu0 %850 }
 0x210   : > { %v1354_v52 = vpop.eup %1353  ;;  %v1667_v53 = vadd.f32 %v851_v51, %v788_v50 }
 0x211   : > { %892 = vrot.lane.b32.xlu1 %v1354_v52, %s1403_s22  ;;  %v853_v56 = vpop.permute.xlu1 %852 }
 0x212   : > { %1359 = vtanh.f32 %v1667_v53  ;;  %v869_v57 = vadd.f32 %v853_v56, %v789_v55 }
 0x214   : > { %v1356_v58 = vpop.eup %1355  ;;  %1361 = vtanh.f32 %v869_v57 }
 0x215   : > { %894 = vrot.lane.b32.xlu0 %v1356_v58, %s1403_s22 }
 0x216   : > { %v1358_v60 = vpop.eup %1357 }
 0x217   : > { %896 = vrot.lane.b32.xlu1 %v1358_v60, %s1403_s22 }
 0x21c   : > { %v1360_v61 = vpop.eup %1359 }
 0x21d   : > { %898 = vrot.lane.b32.xlu0 %v1360_v61, %s1403_s22 }
 0x21e   : > { %v1362_v62 = vpop.eup %1361 }
 0x21f   : > { %900 = vrot.lane.b32.xlu1 %v1362_v62, %s1403_s22 }
 0x277   : > { %v887_v63 = vpop.permute.xlu0 %886 }
 0x278   : > { %v910_v1 = vmul.f32 %v1607_v54, %v887_v63 }
 0x27a   : > { %926 = vrot.lane.b32.xlu0 %v910_v1, %s1404_s16 }
 0x27b   : > { %v889_v2 = vpop.permute.xlu1 %888 }
 0x27c   : > { %v911_v3 = vmul.f32 %v1611_v59, %v889_v2 }
 0x27e   : > { %928 = vrot.lane.b32.xlu1 %v911_v3, %s1404_s16 }
 0x27f   : > { %v891_v4 = vpop.permute.xlu0 %890 }
 0x280   : > { %v912_v6 = vmul.f32 %v1615_v0, %v891_v4 }
 0x282   : > { %930 = vrot.lane.b32.xlu0 %v912_v6, %s1404_s16 }
 0x283   : > { %v893_v7 = vpop.permute.xlu1 %892 }
 0x284   : > { %v913_v8 = vmul.f32 %v1619_v5, %v893_v7 }
 0x286   : > { %932 = vrot.lane.b32.xlu1 %v913_v8, %s1404_s16 }
 0x287   : > { %v895_v10 = vpop.permute.xlu0 %894 }
 0x288   : > { %v914_v11 = vmul.f32 %v1623_v9, %v895_v10 }
 0x289   : > { %v897_v13 = vpop.permute.xlu1 %896 }
 0x28a   : > { %934 = vrot.lane.b32.xlu0 %v914_v11, %s1404_s16  ;;  %v915_v54 = vmul.f32 %v1626_v12, %v897_v13 }
 0x28c   : > { %936 = vrot.lane.b32.xlu1 %v915_v54, %s1404_s16 }
 0x28f   : > { %v899_v14 = vpop.permute.xlu0 %898 }
 0x290   : > { %v916_v59 = vmul.f32 %v1631_v15, %v899_v14 }
 0x291   : > { %v901_v16 = vpop.permute.xlu1 %900 }
 0x292   : > { %938 = vrot.lane.b32.xlu0 %v916_v59, %s1404_s16  ;;  %v917_v0 = vmul.f32 %v1634_v18, %v901_v16 }
 0x294   : > { %940 = vrot.lane.b32.xlu1 %v917_v0, %s1404_s16 }
 0x2ec   : > { %v927_v5 = vpop.permute.xlu0 %926 }
 0x2ed   : > { %v951_v9 = vsel %vm950_vm0, %v927_v5, %v1640_v31 }
 0x2ee   : > { %960 = vst.msk [vmem:[%s274_s5] sm:$0xff] %vm959_vm1, %v951_v9 }
 0x2f0   : > { %v929_v12 = vpop.permute.xlu1 %928 }
 0x2f1   : > { %v952_v15 = vsel %vm950_vm0, %v929_v12, %v1644_v34 }
 0x2f2   : > { %961 = vst.msk [vmem:[%s274_s5 + $0x8] sm:$0xff] %vm959_vm1, %v952_v15 }
 0x2f4   : > { %v931_v17 = vpop.permute.xlu0 %930 }
 0x2f5   : > { %v953_v18 = vsel %vm950_vm0, %v931_v17, %v1648_v37 }
 0x2f6   : > { %962 = vst.msk [vmem:[%s274_s5 + $0x10] sm:$0xff] %vm959_vm1, %v953_v18 }
 0x2f8   : > { %v933_v19 = vpop.permute.xlu1 %932 }
 0x2f9   : > { %v954_v20 = vsel %vm950_vm0, %v933_v19, %v1652_v41 }
 0x2fa   : > { %963 = vst.msk [vmem:[%s274_s5 + $0x18] sm:$0xff] %vm959_vm1, %v954_v20 }
 0x2fc   : > { %v935_v21 = vpop.permute.xlu0 %934 }
 0x2fd   : > { %v955_v22 = vsel %vm950_vm0, %v935_v21, %v1657_v45 }
 0x2fe   : > { %964 = vst.msk [vmem:[%s274_s5 + $0x20] sm:$0xff] %vm959_vm1, %v955_v22  ;;  %v937_v23 = vpop.permute.xlu1 %936 }
 0x2ff   : > { %v956_v24 = vsel %vm950_vm0, %v937_v23, %v1662_v47 }
 0x300   : > { %965 = vst.msk [vmem:[%s274_s5 + $0x28] sm:$0xff] %vm959_vm1, %v956_v24 }
 0x304   : > { %v939_v25 = vpop.permute.xlu0 %938 }
 0x305   : > { %v957_v26 = vsel %vm950_vm0, %v939_v25, %v1667_v53 }
 0x306   : > { %966 = vst.msk [vmem:[%s274_s5 + $0x30] sm:$0xff] %vm959_vm1, %v957_v26  ;;  %v941_v27 = vpop.permute.xlu1 %940 }
 0x307   : > { %v958_v28 = vsel %vm950_vm0, %v941_v27, %v869_v57 }
 0x308   : > { %967 = vst.msk [vmem:[%s274_s5 + $0x38] sm:$0xff] %vm959_vm1, %v958_v28 }
 0x309 PF: > { %s14_s19 = sadd.s32 1, %s1401_s19   ;;  %s1732_s15 = smov %s1393_s17 }
 0x30a   : > { %p11_p7 = scmp.ge.s32.totalorder %s14_s19, 10   ;;  %s1733_s16 = smov %s1397_s18 }
 0x30b   : > { %s1734_s17 = smov %s1737_s20  ;;  %s1735_s18 = smov %s1741_s21 }
 0x30c   :  { %13 = sbr.rel (!%p11_p7) target bundleno = 3 (0x3), region = 69 }

</bundles_post_ra>
